<compile_context>
chip_gen: v6e
topology: v6e:2x2x1
jax: 0.10.0
libtpu: 0.0.40
codegen_flags: <defaults>
</compile_context>

<pallas_src>
import jax
import jax.numpy as jnp
from jax.experimental import pallas as pl
from jax.experimental.pallas import tpu as pltpu


def fm_d_kernel(
    un_ref,        # (1, E, 2K)  f32  [user slots | noise slots], transposed
    w_user_ref,    # (4D, E)     f32  row-stacked lin weights [W0;W1;W2;W3]
    b_user_ref,    # (4D, 1)     f32  row-stacked lin biases
    item_emb_ref,  # (1, D, M)   f32  gathered item embeddings, transposed
    item_feat_ref, # (1, Fi, M)  f32  item features, transposed
    w_item_ref,    # (2D, 2Fi)   f32  blockdiag(w_if^T, (w_if^2)^T)
    ratings_ref,   # (1, 1, M)   f32
    xbias_ref,     # (1, 1, M)   f32  item_bias[item_ids] + user_bias (folded)
    p_ref,         # (4,)        f32  SMEM scalars p1..p4
    out_ref,       # (1, 1, M)   f32
):
    f32 = jnp.float32
    D = w_item_ref.shape[0] // 2          # d_dim
    K = un_ref.shape[2] // 2              # 1 + num_user_feats

    # ---- user side: all four nn.Linear layers in one MXU push ----
    x_t = un_ref[0]                                              # (E, 2K)
    y_t = jnp.dot(w_user_ref[...], x_t,
                  preferred_element_type=f32) + b_user_ref[...]  # (4D, 2K)

    # per-group static slices of the fused result
    u0 = y_t[0 * D:1 * D, 0:1]            # lin0(init_user_emb)      (D, 1)
    u1 = y_t[1 * D:2 * D, 1:K]            # lin1(init_user_feats)    (D, K-1)
    n0 = y_t[2 * D:3 * D, K:K + 1]        # lin2(user_emb_noise)     (D, 1)
    n1 = y_t[3 * D:4 * D, K + 1:2 * K]    # lin3(user_feat_noise)    (D, K-1)

    # slot sums / sums-of-squares (item-independent, computed once)
    u_sum = u0 + jnp.sum(u1, axis=1, keepdims=True)              # (D, 1)
    u_sq = u0 * u0 + jnp.sum(u1 * u1, axis=1, keepdims=True)     # (D, 1)

    nu0 = u0 + n0
    nu1 = u1 + n1
    un_sum = nu0 + jnp.sum(nu1, axis=1, keepdims=True)           # (D, 1)
    un_sq = nu0 * nu0 + jnp.sum(nu1 * nu1, axis=1, keepdims=True)

    # ---- item side: sum & sum-of-squares over item-feature embs in one matmul
    ft = item_feat_ref[0]                                        # (Fi, M)
    xf = jnp.concatenate([ft, ft * ft], axis=0)                  # (2Fi, M)
    sq = jnp.dot(w_item_ref[...], xf,
                 preferred_element_type=f32)                     # (2D, M)
    s_feat = sq[0:D, :]                                          # Σ_i w*f
    q_feat = sq[D:2 * D, :]                                      # Σ_i w²*f²

    ie = item_emb_ref[0]                                         # (D, M)
    s_item = ie + s_feat
    q_item = ie * ie + q_feat

    # ---- FM terms: 0.5 * Σ_d [ (Σ_k e_k)² − Σ_k e_k² ] ----
    s_all = u_sum + s_item                                       # (D, M)
    q_all = u_sq + q_item
    fm_clean = 0.5 * jnp.sum(s_all * s_all - q_all,
                             axis=0, keepdims=True)              # (1, M)

    s_noisy = un_sum + s_item
    q_noisy = un_sq + q_item
    fm_noisy = 0.5 * jnp.sum(s_noisy * s_noisy - q_noisy,
                             axis=0, keepdims=True)              # (1, M)

    p1 = p_ref[0]
    p2 = p_ref[1]
    p3 = p_ref[2]
    p4 = p_ref[3]
    out_ref[0] = (p1 * fm_clean + p2 * ratings_ref[0]
                  + p3 * fm_noisy + p4 * xbias_ref[0])


def fm_d_forward(params, ratings, item_ids, noise, init_user_emb, item_feat,
                 num_user_feats):
    """JAX glue (splits, gathers, weight slab precompute) around the kernel."""
    f32 = jnp.float32
    B, M = item_ids.shape
    E = init_user_emb.shape[-1]
    D = params["emb_item"].shape[-1]
    Fi = params["emb_item_feats"].shape[0]
    K = 1 + num_user_feats                  # user-emb slot + feature slots

    # --- user side: concat [user slots | noise slots] and pre-transpose ---
    user_slots = init_user_emb[:, :K, :]
    noise_slots = noise[:, :K, :]
    un_slots_t = jnp.transpose(
        jnp.concatenate([user_slots, noise_slots], axis=1),
        (0, 2, 1)).astype(f32)                                   # (B, E, 2K)

    init_ub = init_user_emb[:, K:K + 1, :]                       # (B, 1, E)
    user_bias = init_ub[:, :, 0]                                 # (B, 1)

    # fused linear weight slab (row-stacked, torch layout is already (D, E))
    w_user = jnp.concatenate(
        [params[f"lin_w{i}"] for i in range(4)], axis=0).astype(f32)  # (4D, E)
    b_user = jnp.concatenate(
        [params[f"lin_b{i}"] for i in range(4)], axis=0)[:, None].astype(f32)

    # --- item side: integer gathers stay in XLA; transpose to lane-dense ---
    item_emb_t = jnp.transpose(
        params["emb_item"][item_ids], (0, 2, 1)).astype(f32)     # (B, D, M)
    item_feat_t = jnp.swapaxes(item_feat.astype(f32), 1, 2)      # (B, Fi, M)

    # blockdiag(w_if^T, (w_if^2)^T) -- parameters-only, folded on host
    w_if = params["emb_item_feats"].astype(f32)                  # (Fi, D)
    zero = jnp.zeros((D, Fi), f32)
    w_item = jnp.concatenate(
        [jnp.concatenate([w_if.T, zero], axis=1),
         jnp.concatenate([zero, (w_if * w_if).T], axis=1)],
        axis=0)                                                  # (2D, 2Fi)

    # fold user bias into the gathered item bias (drops a (B,1) VMEM operand)
    x_bias = (params["item_bias"][item_ids] + user_bias).astype(f32)  # (B, M)

    ratings3 = ratings.astype(f32)[:, None, :]                   # (B, 1, M)
    xbias3 = x_bias[:, None, :]                                  # (B, 1, M)

    p = jnp.concatenate(
        [params["p1"], params["p2"], params["p3"], params["p4"]]
    ).astype(f32)                                                # (4,)

    vmem_full = lambda shape: pl.BlockSpec(shape, lambda b: (0,) * len(shape))

    out3 = pl.pallas_call(
        fm_d_kernel,
        out_shape=jax.ShapeDtypeStruct((B, 1, M), f32),
        grid=(B,),                                   # one batch row per step
        in_specs=[
            pl.BlockSpec((1, E, 2 * K), lambda b: (b, 0, 0)),     # un_slots_t
            vmem_full((4 * D, E)),                                # w_user
            vmem_full((4 * D, 1)),                                # b_user
            pl.BlockSpec((1, D, M), lambda b: (b, 0, 0)),         # item_emb_t
            pl.BlockSpec((1, Fi, M), lambda b: (b, 0, 0)),        # item_feat_t
            vmem_full((2 * D, 2 * Fi)),                           # w_item
            pl.BlockSpec((1, 1, M), lambda b: (b, 0, 0)),         # ratings
            pl.BlockSpec((1, 1, M), lambda b: (b, 0, 0)),         # x_bias
            pl.BlockSpec(memory_space=pltpu.MemorySpace.SMEM),    # p1..p4
        ],
        out_specs=pl.BlockSpec((1, 1, M), lambda b: (b, 0, 0)),
        compiler_params=pltpu.CompilerParams(
            dimension_semantics=("parallel",),        # megacore-shardable
            vmem_limit_bytes=32 * 1024 * 1024,        # fits v7x's 64 MiB VMEM
        ),
    )(un_slots_t, w_user, b_user, item_emb_t, item_feat_t, w_item,
      ratings3, xbias3, p)

    return out3[:, 0, :]                                         # (B, M)


def fm_d_reference(params, ratings, item_ids, noise, init_user_emb, item_feat,
                   num_user_feats):
    """Literal jnp transcription of the PyTorch forward (for verification)."""
    item_size = item_ids.shape[-1]
    init_ue = init_user_emb[:, 0:1, :]
    init_ufe = init_user_emb[:, 1:1 + num_user_feats, :]
    init_ub = init_user_emb[:, 1 + num_user_feats:, :]
    noise_ue = noise[:, 0:1, :]
    noise_ufe = noise[:, 1:1 + num_user_feats, :]

    def lin(x, i):
        return x @ params[f"lin_w{i}"].T + params[f"lin_b{i}"]

    u0, u1 = lin(init_ue, 0), lin(init_ufe, 1)
    n0, n1 = lin(noise_ue, 2), lin(noise_ufe, 3)
    all_user = jnp.concatenate([u0, u1], axis=1)
    all_noise = jnp.concatenate([n0, n1], axis=1)
    all_user_r = jnp.repeat(all_user[:, None], item_size, axis=1)
    all_noise_r = jnp.repeat(all_noise[:, None], item_size, axis=1)

    x_bias = params["item_bias"][item_ids] + init_ub[:, :, 0]
    item_embs = params["emb_item"][item_ids][:, :, None, :]
    item_feat_embs = jnp.einsum('ij,bmi->bmij', params["emb_item_feats"],
                                item_feat)
    all_item = jnp.concatenate([item_embs, item_feat_embs], axis=2)

    all_embs = jnp.concatenate([all_user_r, all_item], axis=2)
    pos = jnp.sum(all_embs, axis=2) ** 2
    neg = jnp.sum(all_embs ** 2, axis=2)
    denoise = jnp.sum(pos - neg, axis=-1) * 0.5

    noisy = jnp.concatenate([all_user_r + all_noise_r, all_item], axis=2)
    pos2 = jnp.sum(noisy, axis=2) ** 2
    neg2 = jnp.sum(noisy ** 2, axis=2)

    return (params["p1"] * denoise + params["p2"] * ratings
            + params["p3"] * jnp.sum(pos2 - neg2, axis=-1) * 0.5
            + params["p4"] * x_bias)


if __name__ == "__main__":
    # small, module-consistent shapes
    num_users, num_items = 5, 16
    num_user_feats, num_item_feats = 3, 4
    emb_dim, d_dim = 8, 16
    B, M = 2, 8
    n_slots = 1 + num_user_feats + 1   # [user_emb, user_feats..., user_bias]

    key = jax.random.PRNGKey(0)
    keys = jax.random.split(key, 16)

    def kaiming_fan_out(k, shape, fan_out):
        return (jax.random.normal(k, shape, jnp.float32)
                * jnp.sqrt(2.0 / fan_out))

    params = {
        "emb_item": kaiming_fan_out(keys[0], (num_items, d_dim), num_items),
        "emb_item_feats": kaiming_fan_out(keys[1], (num_item_feats, d_dim),
                                          num_item_feats),
        "item_bias": jnp.zeros((num_items,), jnp.float32),
        "p1": jnp.array([1.0], jnp.float32),
        "p2": jnp.array([0.0], jnp.float32),
        "p3": jnp.array([0.0], jnp.float32),
        "p4": jnp.array([1.0], jnp.float32),
    }
    for i in range(4):
        params[f"lin_w{i}"] = kaiming_fan_out(keys[2 + i], (d_dim, emb_dim),
                                              d_dim)
        params[f"lin_b{i}"] = jnp.zeros((d_dim,), jnp.float32)

    ratings = jax.random.uniform(keys[8], (B, M), jnp.float32, 0.0, 5.0)
    item_ids = jax.random.randint(keys[9], (B, M), 0, num_items)
    noise = jax.random.normal(keys[10], (B, n_slots, emb_dim), jnp.float32)
    init_user_emb = jax.random.normal(keys[11], (B, n_slots, emb_dim),
                                      jnp.float32)
    item_feat = jax.random.uniform(keys[12], (B, M, num_item_feats),
                                   jnp.float32)

    out = fm_d_forward(params, ratings, item_ids, noise, init_user_emb,
                       item_feat, num_user_feats)
    out = jax.block_until_ready(out)

    ref = fm_d_reference(params, ratings, item_ids, noise, init_user_emb,
                         item_feat, num_user_feats)
    assert out.shape == (B, M)
    assert jnp.allclose(out, ref, atol=1e-3, rtol=1e-3), (out, ref)
    print("KERNEL_OK")
</pallas_src>

<mosaic_0001>
module attributes {stable_mosaic.version = 11 : i64} {
  func.func @fm_d_kernel(%arg0: i32, %arg1: memref<1x8x8xf32, #tpu.memory_space<vmem>>, %arg2: memref<64x8xf32, #tpu.memory_space<vmem>>, %arg3: memref<64x1xf32, #tpu.memory_space<vmem>>, %arg4: memref<1x16x8xf32, #tpu.memory_space<vmem>>, %arg5: memref<1x4x8xf32, #tpu.memory_space<vmem>>, %arg6: memref<32x8xf32, #tpu.memory_space<vmem>>, %arg7: memref<1x1x8xf32, #tpu.memory_space<vmem>>, %arg8: memref<1x1x8xf32, #tpu.memory_space<vmem>>, %arg9: memref<4xf32, #tpu.memory_space<smem>>, %arg10: memref<1x1x8xf32, #tpu.memory_space<vmem>>) attributes {dimension_semantics = [#tpu.dimension_semantics<parallel>], iteration_bounds = array<i64: 2>, scalar_prefetch = 0 : i64, scratch_operands = 0 : i64, tpu.core_type = #tpu.core_type<tc>, window_params = [{transform_indices = @transform_0, window_bounds = array<i64: 1, 8, 8>}, {pipeline_mode = #tpu.pipeline_mode<synchronous>, transform_indices = @transform_1, window_bounds = array<i64: 64, 8>}, {pipeline_mode = #tpu.pipeline_mode<synchronous>, transform_indices = @transform_2, window_bounds = array<i64: 64, 1>}, {transform_indices = @transform_3, window_bounds = array<i64: 1, 16, 8>}, {transform_indices = @transform_4, window_bounds = array<i64: 1, 4, 8>}, {pipeline_mode = #tpu.pipeline_mode<synchronous>, transform_indices = @transform_5, window_bounds = array<i64: 32, 8>}, {transform_indices = @transform_6, window_bounds = array<i64: 1, 1, 8>}, {transform_indices = @transform_7, window_bounds = array<i64: 1, 1, 8>}, {transform_indices = @transform_8, window_bounds = array<i64: 4>}, {transform_indices = @transform_9, window_bounds = array<i64: 1, 1, 8>}]} {
    %c0 = arith.constant 0 : index
    %c0_0 = arith.constant 0 : index
    %c0_1 = arith.constant 0 : index
    %0 = vector.load %arg1[%c0, %c0_0, %c0_1] : memref<1x8x8xf32, #tpu.memory_space<vmem>>, vector<1x8x8xf32>
    %1 = vector.shape_cast %0 : vector<1x8x8xf32> to vector<8x8xf32>
    %c0_2 = arith.constant 0 : index
    %c0_3 = arith.constant 0 : index
    %2 = vector.load %arg2[%c0_2, %c0_3] : memref<64x8xf32, #tpu.memory_space<vmem>>, vector<64x8xf32>
    %cst = arith.constant dense<0.000000e+00> : vector<64x8xf32>
    %3 = tpu.matmul %2, %1, %cst {dimension_numbers = #tpu.dot_dimension_numbers<[1], [0], [0], [1], [0, 0, 1, 1], [], []>} : vector<64x8xf32>, vector<8x8xf32>, vector<64x8xf32> -> vector<64x8xf32>
    %c0_4 = arith.constant 0 : index
    %c0_5 = arith.constant 0 : index
    %4 = vector.load %arg3[%c0_4, %c0_5] : memref<64x1xf32, #tpu.memory_space<vmem>>, vector<64x1xf32>
    %5 = vector.broadcast %4 : vector<64x1xf32> to vector<64x8xf32>
    %6 = arith.addf %3, %5 : vector<64x8xf32>
    %7 = vector.extract_strided_slice %6 {offsets = [0, 0], sizes = [16, 1], strides = [1, 1]} : vector<64x8xf32> to vector<16x1xf32>
    %8 = vector.extract_strided_slice %6 {offsets = [16, 1], sizes = [16, 3], strides = [1, 1]} : vector<64x8xf32> to vector<16x3xf32>
    %9 = vector.extract_strided_slice %6 {offsets = [32, 4], sizes = [16, 1], strides = [1, 1]} : vector<64x8xf32> to vector<16x1xf32>
    %10 = vector.extract_strided_slice %6 {offsets = [48, 5], sizes = [16, 3], strides = [1, 1]} : vector<64x8xf32> to vector<16x3xf32>
    %cst_6 = arith.constant dense<0.000000e+00> : vector<16xf32>
    %11 = vector.multi_reduction <add>, %8, %cst_6 [1] : vector<16x3xf32> to vector<16xf32>
    %12 = vector.shape_cast %11 : vector<16xf32> to vector<16x1xf32>
    %13 = arith.addf %7, %12 : vector<16x1xf32>
    %14 = arith.mulf %7, %7 : vector<16x1xf32>
    %15 = arith.mulf %8, %8 : vector<16x3xf32>
    %cst_7 = arith.constant dense<0.000000e+00> : vector<16xf32>
    %16 = vector.multi_reduction <add>, %15, %cst_7 [1] : vector<16x3xf32> to vector<16xf32>
    %17 = vector.shape_cast %16 : vector<16xf32> to vector<16x1xf32>
    %18 = arith.addf %14, %17 : vector<16x1xf32>
    %19 = arith.addf %7, %9 : vector<16x1xf32>
    %20 = arith.addf %8, %10 : vector<16x3xf32>
    %cst_8 = arith.constant dense<0.000000e+00> : vector<16xf32>
    %21 = vector.multi_reduction <add>, %20, %cst_8 [1] : vector<16x3xf32> to vector<16xf32>
    %22 = vector.shape_cast %21 : vector<16xf32> to vector<16x1xf32>
    %23 = arith.addf %19, %22 : vector<16x1xf32>
    %24 = arith.mulf %19, %19 : vector<16x1xf32>
    %25 = arith.mulf %20, %20 : vector<16x3xf32>
    %cst_9 = arith.constant dense<0.000000e+00> : vector<16xf32>
    %26 = vector.multi_reduction <add>, %25, %cst_9 [1] : vector<16x3xf32> to vector<16xf32>
    %27 = vector.shape_cast %26 : vector<16xf32> to vector<16x1xf32>
    %28 = arith.addf %24, %27 : vector<16x1xf32>
    %c0_10 = arith.constant 0 : index
    %c0_11 = arith.constant 0 : index
    %c0_12 = arith.constant 0 : index
    %29 = vector.load %arg5[%c0_10, %c0_11, %c0_12] : memref<1x4x8xf32, #tpu.memory_space<vmem>>, vector<1x4x8xf32>
    %30 = vector.shape_cast %29 : vector<1x4x8xf32> to vector<4x8xf32>
    %31 = arith.mulf %30, %30 : vector<4x8xf32>
    %32 = tpu.concatenate %30, %31 in 0 : vector<4x8xf32>, vector<4x8xf32> -> vector<8x8xf32>
    %c0_13 = arith.constant 0 : index
    %c0_14 = arith.constant 0 : index
    %33 = vector.load %arg6[%c0_13, %c0_14] : memref<32x8xf32, #tpu.memory_space<vmem>>, vector<32x8xf32>
    %cst_15 = arith.constant dense<0.000000e+00> : vector<32x8xf32>
    %34 = tpu.matmul %33, %32, %cst_15 {dimension_numbers = #tpu.dot_dimension_numbers<[1], [0], [0], [1], [0, 0, 1, 1], [], []>} : vector<32x8xf32>, vector<8x8xf32>, vector<32x8xf32> -> vector<32x8xf32>
    %35 = vector.extract_strided_slice %34 {offsets = [0, 0], sizes = [16, 8], strides = [1, 1]} : vector<32x8xf32> to vector<16x8xf32>
    %36 = vector.extract_strided_slice %34 {offsets = [16, 0], sizes = [16, 8], strides = [1, 1]} : vector<32x8xf32> to vector<16x8xf32>
    %c0_16 = arith.constant 0 : index
    %c0_17 = arith.constant 0 : index
    %c0_18 = arith.constant 0 : index
    %37 = vector.load %arg4[%c0_16, %c0_17, %c0_18] : memref<1x16x8xf32, #tpu.memory_space<vmem>>, vector<1x16x8xf32>
    %38 = vector.shape_cast %37 : vector<1x16x8xf32> to vector<16x8xf32>
    %39 = arith.addf %38, %35 : vector<16x8xf32>
    %40 = arith.mulf %38, %38 : vector<16x8xf32>
    %41 = arith.addf %40, %36 : vector<16x8xf32>
    %42 = vector.broadcast %13 : vector<16x1xf32> to vector<16x8xf32>
    %43 = arith.addf %42, %39 : vector<16x8xf32>
    %44 = vector.broadcast %18 : vector<16x1xf32> to vector<16x8xf32>
    %45 = arith.addf %44, %41 : vector<16x8xf32>
    %46 = arith.mulf %43, %43 : vector<16x8xf32>
    %47 = arith.subf %46, %45 : vector<16x8xf32>
    %cst_19 = arith.constant dense<0.000000e+00> : vector<8xf32>
    %48 = vector.multi_reduction <add>, %47, %cst_19 [0] : vector<16x8xf32> to vector<8xf32>
    %49 = vector.shape_cast %48 : vector<8xf32> to vector<1x8xf32>
    %cst_20 = arith.constant 5.000000e-01 : f32
    %50 = vector.broadcast %cst_20 : f32 to vector<1x8xf32>
    %51 = arith.mulf %50, %49 : vector<1x8xf32>
    %52 = vector.broadcast %23 : vector<16x1xf32> to vector<16x8xf32>
    %53 = arith.addf %52, %39 : vector<16x8xf32>
    %54 = vector.broadcast %28 : vector<16x1xf32> to vector<16x8xf32>
    %55 = arith.addf %54, %41 : vector<16x8xf32>
    %56 = arith.mulf %53, %53 : vector<16x8xf32>
    %57 = arith.subf %56, %55 : vector<16x8xf32>
    %cst_21 = arith.constant dense<0.000000e+00> : vector<8xf32>
    %58 = vector.multi_reduction <add>, %57, %cst_21 [0] : vector<16x8xf32> to vector<8xf32>
    %59 = vector.shape_cast %58 : vector<8xf32> to vector<1x8xf32>
    %cst_22 = arith.constant 5.000000e-01 : f32
    %60 = vector.broadcast %cst_22 : f32 to vector<1x8xf32>
    %61 = arith.mulf %60, %59 : vector<1x8xf32>
    %c0_23 = arith.constant 0 : index
    %62 = memref.load %arg9[%c0_23] : memref<4xf32, #tpu.memory_space<smem>>
    %c1 = arith.constant 1 : index
    %63 = memref.load %arg9[%c1] : memref<4xf32, #tpu.memory_space<smem>>
    %c2 = arith.constant 2 : index
    %64 = memref.load %arg9[%c2] : memref<4xf32, #tpu.memory_space<smem>>
    %c3 = arith.constant 3 : index
    %65 = memref.load %arg9[%c3] : memref<4xf32, #tpu.memory_space<smem>>
    %66 = vector.broadcast %62 : f32 to vector<1x8xf32>
    %67 = arith.mulf %66, %51 : vector<1x8xf32>
    %c0_24 = arith.constant 0 : index
    %c0_25 = arith.constant 0 : index
    %c0_26 = arith.constant 0 : index
    %68 = vector.load %arg7[%c0_24, %c0_25, %c0_26] : memref<1x1x8xf32, #tpu.memory_space<vmem>>, vector<1x1x8xf32>
    %69 = vector.shape_cast %68 : vector<1x1x8xf32> to vector<1x8xf32>
    %70 = vector.broadcast %63 : f32 to vector<1x8xf32>
    %71 = arith.mulf %70, %69 : vector<1x8xf32>
    %72 = arith.addf %67, %71 : vector<1x8xf32>
    %73 = vector.broadcast %64 : f32 to vector<1x8xf32>
    %74 = arith.mulf %73, %61 : vector<1x8xf32>
    %75 = arith.addf %72, %74 : vector<1x8xf32>
    %c0_27 = arith.constant 0 : index
    %c0_28 = arith.constant 0 : index
    %c0_29 = arith.constant 0 : index
    %76 = vector.load %arg8[%c0_27, %c0_28, %c0_29] : memref<1x1x8xf32, #tpu.memory_space<vmem>>, vector<1x1x8xf32>
    %77 = vector.shape_cast %76 : vector<1x1x8xf32> to vector<1x8xf32>
    %78 = vector.broadcast %65 : f32 to vector<1x8xf32>
    %79 = arith.mulf %78, %77 : vector<1x8xf32>
    %80 = arith.addf %75, %79 : vector<1x8xf32>
    %c0_30 = arith.constant 0 : index
    %c0_31 = arith.constant 0 : index
    %c0_32 = arith.constant 0 : index
    %81 = vector.load %arg10[%c0_30, %c0_31, %c0_32] : memref<1x1x8xf32, #tpu.memory_space<vmem>>, vector<1x1x8xf32>
    %82 = vector.shape_cast %81 : vector<1x1x8xf32> to vector<1x8xf32>
    %83 = vector.shape_cast %80 : vector<1x8xf32> to vector<1x1x8xf32>
    tpu.vector_store %arg10[%c0_30, %c0_31, %c0_32], %83 {strides = array<i32>} : memref<1x1x8xf32, #tpu.memory_space<vmem>>, vector<1x1x8xf32>,
    return
  }
  func.func @transform_0(%arg0: i32) -> (i32, i32, i32) {
    %c0_i32 = arith.constant 0 : i32
    %c0_i32_0 = arith.constant 0 : i32
    %c0_i32_1 = arith.constant 0 : i32
    return %arg0, %c0_i32, %c0_i32_0 : i32, i32, i32
  }
  func.func @transform_1(%arg0: i32) -> (i32, i32) {
    %c0_i32 = arith.constant 0 : i32
    %c0_i32_0 = arith.constant 0 : i32
    %c0_i32_1 = arith.constant 0 : i32
    return %c0_i32, %c0_i32_0 : i32, i32
  }
  func.func @transform_2(%arg0: i32) -> (i32, i32) {
    %c0_i32 = arith.constant 0 : i32
    %c0_i32_0 = arith.constant 0 : i32
    %c0_i32_1 = arith.constant 0 : i32
    return %c0_i32, %c0_i32_0 : i32, i32
  }
  func.func @transform_3(%arg0: i32) -> (i32, i32, i32) {
    %c0_i32 = arith.constant 0 : i32
    %c0_i32_0 = arith.constant 0 : i32
    %c0_i32_1 = arith.constant 0 : i32
    return %arg0, %c0_i32, %c0_i32_0 : i32, i32, i32
  }
  func.func @transform_4(%arg0: i32) -> (i32, i32, i32) {
    %c0_i32 = arith.constant 0 : i32
    %c0_i32_0 = arith.constant 0 : i32
    %c0_i32_1 = arith.constant 0 : i32
    return %arg0, %c0_i32, %c0_i32_0 : i32, i32, i32
  }
  func.func @transform_5(%arg0: i32) -> (i32, i32) {
    %c0_i32 = arith.constant 0 : i32
    %c0_i32_0 = arith.constant 0 : i32
    %c0_i32_1 = arith.constant 0 : i32
    return %c0_i32, %c0_i32_0 : i32, i32
  }
  func.func @transform_6(%arg0: i32) -> (i32, i32, i32) {
    %c0_i32 = arith.constant 0 : i32
    %c0_i32_0 = arith.constant 0 : i32
    %c0_i32_1 = arith.constant 0 : i32
    return %arg0, %c0_i32, %c0_i32_0 : i32, i32, i32
  }
  func.func @transform_7(%arg0: i32) -> (i32, i32, i32) {
    %c0_i32 = arith.constant 0 : i32
    %c0_i32_0 = arith.constant 0 : i32
    %c0_i32_1 = arith.constant 0 : i32
    return %arg0, %c0_i32, %c0_i32_0 : i32, i32, i32
  }
  func.func @transform_8(%arg0: i32) -> i32 {
    %c0_i32 = arith.constant 0 : i32
    %c0_i32_0 = arith.constant 0 : i32
    return %c0_i32 : i32
  }
  func.func @transform_9(%arg0: i32) -> (i32, i32, i32) {
    %c0_i32 = arith.constant 0 : i32
    %c0_i32_0 = arith.constant 0 : i32
    %c0_i32_1 = arith.constant 0 : i32
    return %arg0, %c0_i32, %c0_i32_0 : i32, i32, i32
  }
}

</mosaic_0001>

<bundles_post_ra>
// kernel: tpu_custom_call.1
= control target key start
LH: loop header
LB: loop body
LE: loop exit
PB: predicated region body
PF: predicated region fallthrough
CT: control target
= control target key end

     0   :  { %s1503_s0 = inlined_call_operand.vmem [shape: f32[2,8,8], index: 0, kind: input, shape index: {}]   ;;  %s1504_s1 = inlined_call_operand.vmem [shape: f32[64,8], index: 1, kind: input, shape index: {}]   ;;  %s1505_s2 = inlined_call_operand.vmem [shape: f32[64,1], index: 2, kind: input, shape index: {}]   ;;  %s1506_s3 = inlined_call_operand.vmem [shape: f32[2,16,8], index: 3, kind: input, shape index: {}]   ;;  %s1507_s4 = inlined_call_operand.vmem [shape: f32[2,4,8], index: 4, kind: input, shape index: {}]   ;;  %s1508_s5 = inlined_call_operand.vmem [shape: f32[32,8], index: 5, kind: input, shape index: {}]   ;;  %s1509_s6 = inlined_call_operand.vmem [shape: f32[2,1,8], index: 6, kind: input, shape index: {}]   ;;  %s1510_s7 = inlined_call_operand.vmem [shape: f32[2,1,8], index: 7, kind: input, shape index: {}]   ;;  %s1511_s8 = inlined_call_operand.vmem [shape: f32[4], index: 8, kind: input, shape index: {}]   ;;  %s1512_s9 = inlined_call_operand.hbm [shape: f32[2,1,8], index: 9, kind: output, shape index: {}]  }
   0x1   :  { %1513 = sst [smem:[#allocation8_spill]] %s1511_s8 }
   0x2   :  { %14 = vsyncpa [#allocation4], 0 }
   0x3   :  { %15 = vsyncpa [#allocation3], 0 }
   0x4   :  { %17 = vsyncpa [#allocation3 + $0x1], 0  ;;  %s1277_s30 = smov 0   ;;  %s1279_s10 = smov 0  }
   0x5   :  { %s1281_s11 = smov 0   ;;  %s1283_s12 = smov 0  }
   0x6 LB: > { %s1298_s13 = sadd.s32 4294967295, %s1220_s12   ;;  %s1019_s14 = sadd.s32 4294967294, %s1220_s12   ;;  %s1220_s12 = sphi %s1283_s12, %s1521_s12   ;;  %s1216_s11 = sphi %s1281_s11, %s1520_s11   ;;  %s1212_s10 = sphi %s1279_s10, %s1519_s10   ;;  %s1208_s30 = sphi %s1277_s30, %s1518_s30  }
   0x7   : > { %s1302_s15 = sadd.s32 1, %s1220_s12   ;;  %s244_s16 = sadd.s32 1, %s1216_s11 }
   0x8   : > { %s241_s17 = ssub.s32 %s1220_s12, %s1302_s15  ;;  %p254_p0 = scmp.ne.s32.totalorder %s1216_s11, %s1212_s10 }
   0x9   : > { %p242_p1 = scmp.eq.s32.totalorder %s241_s17, 0  ;;  %p255_p2 = scmp.eq.s32.totalorder %s1298_s13, 1 }
   0xa   : > { %p260_p3 = scmp.ne.s32.totalorder %s1212_s10, %s1208_s30  ;;  %p261_p4 = scmp.eq.s32.totalorder %s1019_s14, 1 }
   0xb   : > { %s1313_s18 = scalar_select %p242_p1, %s1216_s11, %s244_s16  }
   0xc   : > { %p1315_p5 = por %p255_p2, %p254_p0  ;;  %p1319_p6 = por %p261_p4, %p260_p3 }
   0xd   : > { %p1020_p7 = scmp.ge.s32.totalorder %s1220_s12, 1  ;;  %p268_p8 = scmp.lt.s32.totalorder %s1220_s12, 3 }
   0xe   : > { %p1100_p9 = scmp.eq.s32.totalorder %s1298_s13, 0  ;;  %s1517_s8 = sld [smem:[#allocation8_spill]] }
   0xf   : > { %p1326_p10 = pnand %p1020_p7, %p268_p8 }
  0x11   : > { %p1092_p11 = pneg %p1326_p10 }
  0x13   : > { %p1093_p12 = pnand %p1100_p9, %p1092_p11 }
  0x14   : > { %s290_s24 = sshll.u32 %s1517_s8, 4  ;;  %s291_s24 = int_to_ptr.vmem [resolvable:$true] %s290_s24 }
  0x15   : > { %s1141_s25 = scalar_lea.vmem %s291_s24, 16  ;;  %p1143_p0 = pneg %p1093_p12 }
  0x16   : > { %p1142_p13 = scmp.ne.s32.totalorder %s291_s24, %s1141_s25  ;;  %p1149_p3 = scmp.lt.s32.totalorder %s291_s24, %s291_s24 }
  0x17   : > { %p1150_p4 = scmp.lt.s32.totalorder %s1141_s25, %s1141_s25 }
  0x18   : > { %p1144_p1 = pnand %p1143_p0, %p1142_p13 }
  0x19   : > { %p1151_p7 = por %p1150_p4, %p1149_p3 }
  0x1a   : > { %p1145_p2 = pneg %p1144_p1 }
  0x1c   : > { %p1152_p8 = pnand %p1151_p7, %p1145_p2 }
  0x1e   : > { %1155 = shalt.err (!%p1152_p8)
}
  0x1f   : > { %s1222_s26 = smov [#allocation2]   ;;  %337 = sbr.rel (%p1326_p10) target bundleno = 845 (0x34d), region = 56 }
  0x20   : > { %1095 = dma.vmem_to_smem (!%p1093_p12), %s291_s24, 16, %s1222_s26, [#allocation4]  }
  0x24   : > { %1199 = dma.done.wait (%p1100_p9), [#allocation4], 16  }
  0x25   : > { %1201 = vsyncadd (%p1100_p9), [#allocation4], 4294967280 }
  0x26   : > { %343 = sfence }
  0x27   : > { %p387_p11 = scmp.lt.s32.totalorder %s1298_s13, 1  ;;  %v413_v0 = vld [vmem:[%s1504_s1 + $0x30] sm:$0xff]  ;;  %vm463_vm0 = vcmask 64512   ;;  %v407_v1 = vld [vmem:[%s1504_s1] sm:$0xff]  ;;  %v1223_v2 = vmov 0   ;;  %v414_v6 = vld [vmem:[%s1504_s1 + $0x38] sm:$0xff] }
  0x28   : > { %1073 = vmatprep.mubr.msk.f32.mxu1 %vm463_vm0, %v413_v0  ;;  %1064 = vmatprep.mubr.msk.f32.mxu0 %vm463_vm0, %v407_v1  ;;  %v421_v3 = vld [vmem:[%s1505_s2 + $0x30] sm:$0xff]  ;;  %v408_v7 = vld [vmem:[%s1504_s1 + $0x8] sm:$0xff]  ;;  %v422_v9 = vld [vmem:[%s1505_s2 + $0x38] sm:$0xff]  ;;  %s1224_s17 = smov 124   ;;  %vm691_vm1 = vcmask 1043456   ;;  %vm601_vm2 = vcmask 23552  }
  0x29   : > { %s1353_s16 = scalar_select %p387_p11, %s1298_s13, 1  ;;  %1139 = vset.pattern.permute.xlu0 %v1223_v2  ;;  %1140 = vset.pattern.permute.xlu1 %v1223_v2  ;;  %v417_v4 = vld [vmem:[%s1505_s2 + $0x10] sm:$0xff]  ;;  %v418_v10 = vld [vmem:[%s1505_s2 + $0x18] sm:$0xff]  ;;  %v411_v12 = vld [vmem:[%s1504_s1 + $0x20] sm:$0xff]  ;;  %vm895_vm3 = vcmask 57344  }
  0x2a   : > { %455 = vperm.xlu0 %1139, %v421_v3   ;;  %435 = vperm.xlu1 %1140, %v417_v4   ;;  %v409_v8 = vld [vmem:[%s1504_s1 + $0x10] sm:$0xff]  ;;  %v410_v11 = vld [vmem:[%s1504_s1 + $0x18] sm:$0xff]  ;;  %v412_v13 = vld [vmem:[%s1504_s1 + $0x28] sm:$0xff]  ;;  %s878_s23 = sld [smem:[#allocation2]]  ;;  %s385_s21 = sand.u32 1, %s1212_s10  }
  0x2b   : > { %s1025_s24 = sshll.u32 %s1353_s16, 3  ;;  %v420_v23 = vld [vmem:[%s1505_s2 + $0x28] sm:$0xff]  ;;  %v419_v25 = vld [vmem:[%s1505_s2 + $0x20] sm:$0xff]  ;;  %s1028_s8 = sshll.u32 %s1353_s16, 2  ;;  %v695_v39 = vld [vmem:[%s1508_s5 + $0x10] sm:$0xff] }
  0x2c   : > { %s390_s27 = scalar_lea.vmem %s1503_s0, %s1025_s24  ;;  %v415_v27 = vld [vmem:[%s1505_s2] sm:$0xff]  ;;  %s399_s22 = scalar_lea.vmem %s1507_s4, %s1028_s8  ;;  %v694_v38 = vld [vmem:[%s1508_s5 + $0x8] sm:$0xff]  ;;  %v696_v40 = vld [vmem:[%s1508_s5 + $0x18] sm:$0xff] }
  0x2d   : > { %v406_v5 = vld [vmem:[%s390_s27] sm:$0xff]  ;;  %s1225_s27 = smov 127   ;;  %v416_v3 = vld [vmem:[%s1505_s2 + $0x8] sm:$0xff]  ;;  %s1041_s24 = sld [smem:[#allocation2 + $0x1]] }
  0x2e   : > { %1084 = vmatprep.subr.mxu1 %v406_v5  ;;  %1062 = vmatprep.subr.mxu0 %v406_v5  ;;  %v693_v33 = vld [vmem:[%s1508_s5] sm:$0xff]  ;;  %s1042_s25 = sld [smem:[#allocation2 + $0x2]]  ;;  %s405_s14 = scalar_lea.vmem %s1510_s7, %s1353_s16 }
  0x2f   : > { %1085 = vmatpush3.msra.mxu1 %v406_v5  ;;  %1063 = vmatpush3.msra.mxu0 %v406_v5  ;;  %v686_v34 = vld [vmem:[%s399_s22] sm:$0xf]  ;;  %s1043_s26 = sld [smem:[#allocation2 + $0x3]] }
  0x30   : > { %1074 = vmatmul.mubr.msk.f32.vlgmr.msra.gmra.mxu1 %vm463_vm0, %v414_v6  ;;  %1065 = vmatmul.mubr.msk.f32.vlgmr.msra.gmra.mxu0 %vm463_vm0, %v408_v7  ;;  %v687_v35 = vmul.f32 %v686_v34, %v686_v34 }
  0x31   : > { %1067 = vmatprep.mubr.msk.f32.mxu0 %vm463_vm0, %v409_v8  ;;  %460 = vperm.xlu0 %1139, %v422_v9  }
  0x32   : > { %440 = vperm.xlu1 %1140, %v418_v10   ;;  %1078 = vmatprep.mubr.msk.f32.mxu1 %vm463_vm0, %v693_v33  ;;  %v689_v36 = vrot.slane %v687_v35, 4 }
  0x34   : > { %1068 = vmatmul.mubr.msk.f32.gmra.mxu0 %vm463_vm0, %v410_v11  ;;  %v692_v37 = vsel %vm691_vm1, %v686_v34, %v689_v36 }
  0x35   : > { %1070 = vmatprep.mubr.msk.f32.mxu0 %vm463_vm0, %v411_v12  ;;  %1076 = vmatprep.subr.mxu1 %v692_v37 }
  0x36   : > { %1077 = vmatpush3.msra.mxu1 %v692_v37 }
  0x37   : > { %1079 = vmatmul.mubr.msk.f32.vlgmr.msra.gmra.mxu1 %vm463_vm0, %v694_v38 }
  0x38   : > { %1071 = vmatmul.mubr.msk.f32.gmra.mxu0 %vm463_vm0, %v412_v13  ;;  %1081 = vmatprep.mubr.msk.f32.mxu1 %vm463_vm0, %v695_v39 }
  0x3b   : > { %1082 = vmatmul.mubr.msk.f32.gmra.mxu1 %vm463_vm0, %v696_v40 }
  0xa5   : > { %v456_v14 = vpop.permute.xlu0 %455  ;;  %v436_v19 = vpop.permute.xlu1 %435 }
  0xac   : > { %v461_v15 = vpop.permute.xlu0 %460 }
  0xad   : > { %v441_v28 = vpop.permute.xlu1 %440 }
  0xf0   : > { %v1075_v16 = vpop.f32.mrf.mxu1  ;;  %v1395_v17 = vpop.f32.mrf.mxu0 }
  0xf1   : > { %v590_v18 = vadd.f32 %v1075_v16, %v461_v15 }
  0xf2   : > { %v584_v20 = vpop.f32.mrf.mxu1  ;;  %v1397_v21 = vpop.f32.mrf.mxu0 }
  0xf3   : > { %v585_v22 = vadd.f32 %v584_v20, %v456_v14  ;;  %644 = vrot.lane.b32.xlu1 %v590_v18, %s1224_s17 }
  0xf4   : > { %v1069_v24 = vpop.f32.mrf.mxu0 }
  0xf5   : > { %642 = vrot.lane.b32.xlu0 %v585_v22, %s1224_s17  ;;  %v570_v30 = vadd.f32 %v1069_v24, %v441_v28 }
  0xf6   : > { %v564_v26 = vpop.f32.mrf.mxu0 }
  0xf7   : > { %450 = vperm.xlu1 %1140, %v420_v23   ;;  %v565_v29 = vadd.f32 %v564_v26, %v436_v19  ;;  %v613_v32 = vmul.f32 %v570_v30, %v570_v30  ;;  %v1080_v35 = vpop.f32.mrf.mxu1 }
  0xf8   : > { %v1072_v0 = vpop.f32.mrf.mxu0 }
  0xf9   : > { %445 = vperm.xlu0 %1139, %v419_v25   ;;  %v612_v31 = vmul.f32 %v565_v29, %v565_v29 }
  0xfa   : > { %v574_v1 = vpop.f32.mrf.mxu0 }
  0xfb   : > { %425 = vperm.xlu1 %1140, %v415_v27  }
  0xfd   : > { %595 = vrot.lane.b32.xlu0 %v565_v29, %s1225_s27 }
  0xff   : > { %597 = vrot.lane.b32.xlu1 %v570_v30, %s1225_s27 }
 0x101   : > { %616 = vrot.lane.b32.xlu0 %v612_v31, %s1225_s27 }
 0x103   : > { %618 = vrot.lane.b32.xlu1 %v613_v32, %s1225_s27 }
 0x165   : > { %v645_v41 = vpop.permute.xlu1 %644 }
 0x166   : > { %v649_v42 = vadd.f32 %v645_v41, %v570_v30 }
 0x167   : > { %v643_v43 = vpop.permute.xlu0 %642 }
 0x168   : > { %v648_v44 = vadd.f32 %v643_v43, %v565_v29  ;;  %654 = vrot.lane.b32.xlu1 %v649_v42, %s1225_s27  ;;  %v669_v45 = vmul.f32 %v649_v42, %v649_v42 }
 0x16a   : > { %652 = vrot.lane.b32.xlu0 %v648_v44, %s1225_s27  ;;  %v668_v46 = vmul.f32 %v648_v44, %v648_v44 }
 0x16c   : > { %674 = vrot.lane.b32.xlu1 %v669_v45, %s1225_s27 }
 0x16e   : > { %672 = vrot.lane.b32.xlu0 %v668_v46, %s1225_s27  ;;  %s402_s27 = scalar_lea.vmem %s1509_s6, %s1353_s16 }
 0x172   : > { %v451_v47 = vpop.permute.xlu1 %450 }
 0x173   : > { %v580_v13 = vadd.f32 %v1072_v0, %v451_v47 }
 0x174   : > { %v446_v49 = vpop.permute.xlu0 %445 }
 0x175   : > { %v575_v2 = vadd.f32 %v574_v1, %v446_v49 }
 0x176   : > { %v426_v48 = vpop.permute.xlu1 %425 }
 0x177   : > { %v555_v6 = vadd.f32 %v1397_v21, %v426_v48 }
 0x178   : > { %v596_v51 = vpop.permute.xlu0 %595 }
 0x179   : > { %v602_v52 = vsel %vm601_vm2, %v596_v51, 0.0  ;;  %v610_v10 = vmul.f32 %v555_v6, %v555_v6 }
 0x17a   : > { %v598_v50 = vpop.permute.xlu1 %597 }
 0x17b   : > { %v605_v54 = vsel %vm601_vm2, %v598_v50, 0.0 }
 0x17c   : > { %v617_v56 = vpop.permute.xlu0 %616 }
 0x17d   : > { %v622_v57 = vsel %vm601_vm2, %v617_v56, 0.0 }
 0x17e   : > { %v619_v53 = vpop.permute.xlu1 %618 }
 0x17f   : > { %v625_v55 = vsel %vm601_vm2, %v619_v53, 0.0 }
 0x18d   : > { %603 = vadd.xlane.f32.xlu0 %v602_v52 }
 0x190   : > { %606 = vadd.xlane.f32.xlu1 %v605_v54 }
 0x191   : > { %626 = vadd.xlane.f32.xlu0 %v625_v55 }
 0x195   : > { %623 = vadd.xlane.f32.xlu0 %v622_v57 }
 0x1da   : > { %v655_v58 = vpop.permute.xlu1 %654 }
 0x1db   : > { %v661_v59 = vsel %vm601_vm2, %v655_v58, 0.0 }
 0x1dc   : > { %662 = vadd.xlane.f32.xlu0 %v661_v59  ;;  %v653_v60 = vpop.permute.xlu0 %652 }
 0x1dd   : > { %v658_v61 = vsel %vm601_vm2, %v653_v60, 0.0 }
 0x1de   : > { %v675_v62 = vpop.permute.xlu1 %674  ;;  %659 = vadd.xlane.f32.xlu1 %v658_v61 }
 0x1df   : > { %v681_v63 = vsel %vm601_vm2, %v675_v62, 0.0 }
 0x1e0   : > { %682 = vadd.xlane.f32.xlu0 %v681_v63  ;;  %v673_v4 = vpop.permute.xlu0 %672 }
 0x1e1   : > { %v678_v5 = vsel %vm601_vm2, %v673_v4, 0.0 }
 0x1ef   : > { %632 = vrot.lane.b32.xlu1 %v575_v2, %s1224_s17 }
 0x1f6   : > { %430 = vperm.xlu0 %1139, %v416_v3  }
 0x213   : > { %679 = vadd.xlane.f32.xlu1 %v678_v5 }
 0x216   : > { %v604_v7 = vpop.xlane.xlu0 %603 }
 0x217   : > { %v608_v8 = vadd.f32 %v604_v7, %v555_v6 }
 0x219   : > { %804 = vperm.xlu0 %1139, %v608_v8   ;;  %v607_v14 = vpop.xlane.xlu1 %606 }
 0x21a   : > { %v627_v9 = vpop.xlane.xlu0 %626 }
 0x21e   : > { %v624_v11 = vpop.xlane.xlu0 %623 }
 0x21f   : > { %v628_v12 = vadd.f32 %v624_v11, %v610_v10 }
 0x221   : > { %816 = vperm.xlu0 %1139, %v628_v12  }
 0x224   : > { %634 = vrot.lane.b32.xlu1 %v580_v13, %s1224_s17  ;;  %s1047_s17 = sshll.u32 %s1353_s16, 4 }
 0x225   : > { %s395_s22 = scalar_lea.vmem %s1506_s3, %s1047_s17 }
 0x226   : > { %v795_v36 = vld [vmem:[%s395_s22 + $0x8] sm:$0xff]  ;;  %v794_v40 = vld [vmem:[%s395_s22] sm:$0xff]  ;;  %s1044_s22 = sshll.u32 %s1298_s13, 4 }
 0x227   : > { %v799_v39 = vmul.f32 %v795_v36, %v795_v36  ;;  %v797_v41 = vadd.f32 %v1080_v35, %v795_v36  ;;  %v798_v42 = vmul.f32 %v794_v40, %v794_v40  ;;  %s908_s28 = scalar_lea.hbm %s1512_s9, %s1044_s22 }
 0x265   : > { %v663_v15 = vpop.xlane.xlu0 %662 }
 0x267   : > { %v660_v16 = vpop.xlane.xlu1 %659 }
 0x269   : > { %v683_v20 = vpop.xlane.xlu0 %682 }
 0x26b   : > { %v633_v18 = vpop.permute.xlu1 %632 }
 0x26c   : > { %v638_v19 = vadd.f32 %v633_v18, %v555_v6 }
 0x26e   : > { %v664_v22 = vadd.f32 %v660_v16, %v638_v19  ;;  %v666_v27 = vmul.f32 %v638_v19, %v638_v19 }
 0x270   : > { %842 = vperm.xlu0 %1139, %v664_v22  }
 0x271   : > { %v431_v21 = vpop.permute.xlu0 %430 }
 0x272   : > { %v560_v23 = vadd.f32 %v1395_v17, %v431_v21  ;;  %v775_v17 = vpop.f32.mrf.mxu1 }
 0x273   : > { %v796_v45 = vadd.f32 %v794_v40, %v775_v17 }
 0x274   : > { %v611_v24 = vmul.f32 %v560_v23, %v560_v23  ;;  %v609_v25 = vadd.f32 %v607_v14, %v560_v23  ;;  %v1083_v37 = vpop.f32.mrf.mxu1 }
 0x275   : > { %v801_v46 = vadd.f32 %v1083_v37, %v799_v39 }
 0x276   : > { %809 = vperm.xlu1 %1140, %v609_v25   ;;  %v629_v26 = vadd.f32 %v627_v9, %v611_v24  ;;  %v785_v44 = vpop.f32.mrf.mxu1  ;;  %v882_v24 = vstv %s878_s23  ;;  %v884_v25 = vld [vmem:[%s402_s27] sm:$0x1]  ;;  %s386_s23 = scalar_lea.vmem [#allocation5], %s385_s21 }
 0x277   : > { %v800_v48 = vadd.f32 %v798_v42, %v785_v44 }
 0x27a   : > { %821 = vperm.xlu1 %1140, %v629_v26   ;;  %v885_v26 = vstv %s1041_s24  ;;  %s910_s24 = sshll.u32 %s386_s23, 4  ;;  %s911_s24 = int_to_ptr.vmem [resolvable:$true] %s910_s24 }
 0x27b   : > { %s1156_s27 = scalar_lea.vmem %s911_s24, 16 }
 0x27c   : > { %p1157_p9 = scmp.ne.s32.totalorder %s911_s24, %s1156_s27 }
 0x27e   : > { %p1158_p10 = pnand %p1157_p9, %p1315_p5 }
 0x280   : > { %p1159_p12 = pneg %p1158_p10 }
 0x294   : > { %v805_v43 = vpop.permute.xlu0 %804 }
 0x295   : > { %v812_v51 = vadd.f32 %v805_v43, %v796_v45 }
 0x297   : > { %v826_v55 = vmul.f32 %v812_v51, %v812_v51 }
 0x29c   : > { %v680_v28 = vpop.xlane.xlu1 %679  ;;  %v817_v50 = vpop.permute.xlu0 %816 }
 0x29d   : > { %v684_v29 = vadd.f32 %v680_v28, %v666_v27  ;;  %v824_v53 = vadd.f32 %v817_v50, %v800_v48 }
 0x29f   : > { %854 = vperm.xlu0 %1139, %v684_v29   ;;  %v828_v57 = vsub.f32 %v826_v55, %v824_v53 }
 0x2a0   : > { %v635_v30 = vpop.permute.xlu1 %634 }
 0x2a1   : > { %v639_v31 = vadd.f32 %v635_v30, %v560_v23  ;;  %v830_v59 = vsel %vm463_vm0, %v828_v57, 0.0  ;;  %v886_v30 = vmul.f32 %v885_v26, %v884_v25 }
 0x2a3   : > { %v665_v32 = vadd.f32 %v663_v15, %v639_v31  ;;  %v667_v33 = vmul.f32 %v639_v31, %v639_v31  ;;  %v888_v31 = vstv %s1042_s25  ;;  %s898_s25 = scalar_lea.sflag [#allocation3], %s385_s21 }
 0x2a5   : > { %847 = vperm.xlu1 %1140, %v665_v32   ;;  %v685_v34 = vadd.f32 %v683_v20, %v667_v33  ;;  %v891_v32 = vld [vmem:[%s405_s14] sm:$0x1]  ;;  %v892_v33 = vstv %s1043_s26  ;;  %s1226_s26 = smov [#allocation5]  }
 0x2a6   : > { %v893_v36 = vmul.f32 %v892_v33, %v891_v32  ;;  %s1160_s29 = sshll.u32 %s1226_s26, 4  ;;  %s1161_s29 = int_to_ptr.vmem [resolvable:$false] %s1160_s29 }
 0x2a7   : > { %s1162_s13 = scalar_lea.vmem %s1161_s29, 32  ;;  %p1163_p13 = scmp.lt.s32.totalorder %s911_s24, %s1161_s29 }
 0x2a8   : > { %p1164_p0 = scmp.lt.s32.totalorder %s1162_s13, %s1156_s27 }
 0x2a9   : > { %859 = vperm.xlu1 %1140, %v685_v34  }
 0x2aa   : > { %p1165_p1 = por %p1164_p0, %p1163_p13 }
 0x2ac   : > { %p1166_p2 = pnand %p1165_p1, %p1159_p12 }
 0x2eb   : > { %v843_v61 = vpop.permute.xlu0 %842 }
 0x2ec   : > { %v850_v1 = vadd.f32 %v843_v61, %v796_v45 }
 0x2ee   : > { %v864_v6 = vmul.f32 %v850_v1, %v850_v1 }
 0x2f1   : > { %v810_v38 = vpop.permute.xlu1 %809 }
 0x2f2   : > { %v813_v49 = vadd.f32 %v810_v38, %v797_v41 }
 0x2f4   : > { %v827_v54 = vmul.f32 %v813_v49, %v813_v49 }
 0x2f5   : > { %v822_v47 = vpop.permute.xlu1 %821 }
 0x2f6   : > { %v825_v52 = vadd.f32 %v822_v47, %v801_v46 }
 0x2f8   : > { %v829_v56 = vsub.f32 %v827_v54, %v825_v52 }
 0x2fa   : > { %v831_v58 = vsel %vm463_vm0, %v829_v56, 0.0 }
 0x2fb   : > { %v832_v60 = vadd.f32 %v831_v58, %v830_v59 }
 0x2fd   : > { %v833_v62 = vrot.slane %v832_v60, 4 }
 0x2ff   : > { %v834_v63 = vadd.f32 %v833_v62, %v832_v60 }
 0x301   : > { %v835_v5 = vrot.slane %v834_v63, 2 }
 0x303   : > { %v836_v11 = vadd.f32 %v835_v5, %v834_v63 }
 0x305   : > { %v837_v15 = vrot.slane %v836_v11, 1 }
 0x307   : > { %v838_v19 = vadd.f32 %v837_v15, %v836_v11 }
 0x309   : > { %v839_v21 = vmul.f32 0.5, %v838_v19 }
 0x30b   : > { %v883_v29 = vmul.f32 %v882_v24, %v839_v21 }
 0x30d   : > { %v887_v35 = vadd.f32 %v886_v30, %v883_v29 }
 0x31a   : > { %v855_v0 = vpop.permute.xlu0 %854 }
 0x31b   : > { %v862_v3 = vadd.f32 %v855_v0, %v800_v48 }
 0x31d   : > { %v866_v8 = vsub.f32 %v864_v6, %v862_v3 }
 0x31f   : > { %v868_v13 = vsel %vm463_vm0, %v866_v8, 0.0 }
 0x320   : > { %v848_v2 = vpop.permute.xlu1 %847 }
 0x321   : > { %v851_v4 = vadd.f32 %v848_v2, %v797_v41 }
 0x323   : > { %v865_v9 = vmul.f32 %v851_v4, %v851_v4 }
 0x324   : > { %v860_v7 = vpop.permute.xlu1 %859 }
 0x325   : > { %v863_v10 = vadd.f32 %v860_v7, %v801_v46 }
 0x327   : > { %v867_v12 = vsub.f32 %v865_v9, %v863_v10 }
 0x329   : > { %v869_v14 = vsel %vm463_vm0, %v867_v12, 0.0 }
 0x32a   : > { %v870_v16 = vadd.f32 %v869_v14, %v868_v13 }
 0x32c   : > { %v871_v18 = vrot.slane %v870_v16, 4 }
 0x32e   : > { %v872_v20 = vadd.f32 %v871_v18, %v870_v16 }
 0x330   : > { %v873_v22 = vrot.slane %v872_v20, 2 }
 0x332   : > { %v874_v23 = vadd.f32 %v873_v22, %v872_v20 }
 0x334   : > { %v875_v27 = vrot.slane %v874_v23, 1 }
 0x336   : > { %v876_v28 = vadd.f32 %v875_v27, %v874_v23 }
 0x338   : > { %v877_v34 = vmul.f32 0.5, %v876_v28 }
 0x33a   : > { %v889_v17 = vmul.f32 %v888_v31, %v877_v34 }
 0x33c   : > { %v890_v37 = vadd.f32 %v889_v17, %v887_v35 }
 0x33e   : > { %v894_v38 = vadd.f32 %v893_v36, %v890_v37 }
 0x340   : > { %896 = vst.msk [vmem:[%s386_s23] sm:$0x1] %vm895_vm3, %v894_v38 }
 0x341   : > { %1169 = shalt.err (!%p1166_p2)
}
 0x342   : > { %s1170_s17 = scalar_lea.hbm %s908_s28, 16  ;;  %s1174_s22 = scalar_lea.hbm %s1512_s9, 32 }
 0x343   : > { %p1171_p3 = scmp.ne.s32.totalorder %s908_s28, %s1170_s17  ;;  %p1175_p8 = scmp.lt.s32.totalorder %s908_s28, %s1512_s9 }
 0x344   : > { %p1176_p11 = scmp.lt.s32.totalorder %s1174_s22, %s1170_s17 }
 0x345   : > { %p1172_p4 = pnand %p1171_p3, %p1315_p5 }
 0x346   : > { %p1177_p9 = por %p1176_p11, %p1175_p8 }
 0x347   : > { %p1173_p7 = pneg %p1172_p4 }
 0x349   : > { %p1178_p10 = pnand %p1177_p9, %p1173_p7 }
 0x34b   : > { %1181 = shalt.err (!%p1178_p10)
}
 0x34c   : > { %1090 = dma.vmem_to_hbm [thread:$0]  (%p1315_p5), %s911_s24, 16, %s908_s28, %s898_s25  }
 0x34d PF: > { %p1102_p12 = scmp.ge.s32.totalorder %s1220_s12, 2  ;;  %s922_s16 = sand.u32 1, %s1208_s30  }
 0x34e   : > { %s923_s27 = scalar_lea.sflag [#allocation3], %s922_s16 }
 0x34f   : > { %p1097_p13 = pnand %p1102_p12, %p1319_p6 }
 0x351   : > { %p1098_p0 = pneg %p1097_p13 }
 0x353   : > { %1203 = dma.done.wait (%p1098_p0), %s923_s27, 16  }
 0x354   : > { %1205 = vsyncadd (%p1098_p0), %s923_s27, 4294967280  ;;  %p20_p1 = scmp.ge.s32.totalorder %s1302_s15, 4   ;;  %s1518_s30 = smov %s1212_s10 }
 0x355   : > { %s1519_s10 = smov %s1216_s11  ;;  %s1520_s11 = smov %s1313_s18 }
 0x356   : > { %s1521_s12 = smov %s1302_s15  ;;  %22 = sbr.rel (!%p20_p1) target bundleno = 6 (0x6), region = 108 }
 0x35b   :  { %927 = vsyncpa [#allocation3], 1 }
 0x35c   :  { %929 = vsyncpa [#allocation3 + $0x1], 1 }
 0x35d   :  { %930 = vsyncpa [#allocation4], 1 }
 0x35e   :  { %932 = vsyncpa [#allocation4 + $0x1], 1 }

</bundles_post_ra>
